<compile_context>
chip_gen: v6e
topology: v6e:2x2x1
jax: 0.10.0
libtpu: 0.0.40
codegen_flags: <defaults>
</compile_context>

<pallas_src>
import functools

import jax
import jax.numpy as jnp
from jax.experimental import pallas as pl
from jax.experimental.pallas import tpu as pltpu


def _conv_bn_lrelu_kernel(x_ref, w_ref, shift_ref, o_ref, *,
                          kernel_size, stride, h_out, w_out, negative_slope):
    # x_ref:     (1, C_in, H_pad, W_pad)   padded NCHW input, one image (bf16)
    # w_ref:     (C_out, K*K*C_in)         BN-scale-folded conv weight (bf16)
    # shift_ref: (C_out, 1)                fused conv-bias + BN shift (f32)
    # o_ref:     (1, C_out, H_out*W_out)   lane-dense NCHW-flattened output (f32)
    k, s = kernel_size, stride
    x = x_ref[0]                                       # (C_in, H_pad, W_pad) bf16
    c_in = x.shape[0]
    m = h_out * w_out

    # In-register im2col: K*K shifted windows of the padded plane, stacked along
    # the contraction axis (no HBM im2col blow-up, stays bf16).
    wins = []
    for kh in range(k):
        for kw in range(k):
            wins.append(
                x[:, kh:kh + (h_out - 1) * s + 1:s,
                     kw:kw + (w_out - 1) * s + 1:s])   # (C_in, H_out, W_out)
    cols = jnp.concatenate(wins, axis=0)               # (K*K*C_in, H_out, W_out)
    cols = cols.reshape(k * k * c_in, m)               # lane-dense RHS (.., M)

    # Single MXU matmul with f32 accumulation.
    acc = jnp.dot(w_ref[...], cols,
                  preferred_element_type=jnp.float32)  # (C_out, M)

    # Fused BN shift + LeakyReLU epilogue; (C_out, M) is already NCHW flattened.
    y = acc + shift_ref[...]
    y = jnp.where(y >= 0.0, y, negative_slope * y)
    o_ref[0] = y.astype(o_ref.dtype)


def conv_layer_forward(x, params, *, kernel_size, stride, padding,
                       eps=1e-5, negative_slope=0.1,
                       compute_dtype=jnp.bfloat16):
    """Forward pass of ConvLayer. x is NCHW float32; returns NCHW float32."""
    weight = params["weight"]              # (Cout, Cin, K, K)
    bias = params["bias"]                  # (Cout,)
    gamma = params["gamma"]                # (Cout,)
    beta = params["beta"]                  # (Cout,)
    running_mean = params["running_mean"]  # (Cout,)
    running_var = params["running_var"]    # (Cout,)

    n, c_in, h, w = x.shape
    c_out = weight.shape[0]
    k, s, p = kernel_size, stride, padding
    h_out = (h + 2 * p - k) // s + 1
    w_out = (w + 2 * p - k) // s + 1
    h_pad, w_pad = h + 2 * p, w + 2 * p
    m_img = h_out * w_out

    # Spatial zero-padding only; the layout stays NCHW (no transpose in HBM).
    x_padded = jnp.pad(x, ((0, 0), (0, 0), (p, p), (p, p))).astype(compute_dtype)

    # Fold BN (inference form) into the weight / a single per-channel shift:
    #   y = (conv(x) + bias - mean) * scale + beta,  scale = gamma / sqrt(var + eps)
    scale = gamma / jnp.sqrt(running_var + eps)                        # (Cout,)
    w_eff = weight.astype(jnp.float32) * scale[:, None, None, None]    # (Cout, Cin, K, K)
    # Column order (kh, kw, c_in) to match the in-kernel window stacking.
    w2d = jnp.transpose(w_eff, (0, 2, 3, 1)).reshape(c_out, k * k * c_in)
    w2d = w2d.astype(compute_dtype)
    shift = ((bias - running_mean) * scale + beta).reshape(c_out, 1).astype(jnp.float32)

    kernel = functools.partial(
        _conv_bn_lrelu_kernel, kernel_size=k, stride=s,
        h_out=h_out, w_out=w_out, negative_slope=negative_slope)

    out = pl.pallas_call(
        kernel,
        out_shape=jax.ShapeDtypeStruct((n, c_out, m_img), jnp.float32),
        grid_spec=pltpu.PrefetchScalarGridSpec(
            num_scalar_prefetch=0,
            grid=(n,),
            in_specs=[
                pl.BlockSpec((1, c_in, h_pad, w_pad), lambda i: (i, 0, 0, 0)),
                pl.BlockSpec((c_out, k * k * c_in), lambda i: (0, 0)),
                pl.BlockSpec((c_out, 1), lambda i: (0, 0)),
            ],
            out_specs=pl.BlockSpec((1, c_out, m_img), lambda i: (i, 0, 0)),
        ),
        compiler_params=pltpu.CompilerParams(
            dimension_semantics=("parallel",),
            vmem_limit_bytes=32 * 1024 * 1024),
    )(x_padded, w2d, shift)

    # (N, Cout, Hout*Wout) -> (N, Cout, Hout, Wout): pure reshape, no transpose.
    return out.reshape(n, c_out, h_out, w_out)


def _reference_forward(x, params, *, kernel_size, stride, padding,
                       eps=1e-5, negative_slope=0.1):
    """Pure-JAX f32 reference (same semantics) for correctness checking."""
    y = jax.lax.conv_general_dilated(
        x, params["weight"],
        window_strides=(stride, stride),
        padding=[(padding, padding), (padding, padding)],
        dimension_numbers=("NCHW", "OIHW", "NCHW"))
    y = y + params["bias"][None, :, None, None]
    scale = params["gamma"] / jnp.sqrt(params["running_var"] + eps)
    y = (y - params["running_mean"][None, :, None, None]) * scale[None, :, None, None]
    y = y + params["beta"][None, :, None, None]
    return jnp.where(y >= 0.0, y, negative_slope * y)


if __name__ == "__main__":
    # Shapes consistent with ConvLayer(in_channels=4, out_channels=8, k=3, s=1, p=1)
    N, C_IN, H, W = 2, 4, 16, 16
    C_OUT, K, STRIDE, PAD = 8, 3, 1, 1

    key = jax.random.PRNGKey(0)
    kx, kw, kb, kg, kbeta, km, kv = jax.random.split(key, 7)

    x = jax.random.normal(kx, (N, C_IN, H, W), dtype=jnp.float32)
    params = {
        "weight": jax.random.normal(kw, (C_OUT, C_IN, K, K), dtype=jnp.float32) * 0.1,
        "bias": jax.random.normal(kb, (C_OUT,), dtype=jnp.float32) * 0.1,
        "gamma": 1.0 + 0.1 * jax.random.normal(kg, (C_OUT,), dtype=jnp.float32),
        "beta": 0.1 * jax.random.normal(kbeta, (C_OUT,), dtype=jnp.float32),
        "running_mean": 0.1 * jax.random.normal(km, (C_OUT,), dtype=jnp.float32),
        "running_var": 1.0 + 0.1 * jnp.abs(jax.random.normal(kv, (C_OUT,), dtype=jnp.float32)),
    }

    out = conv_layer_forward(x, params, kernel_size=K, stride=STRIDE, padding=PAD)
    out = jax.block_until_ready(out)

    ref = _reference_forward(x, params, kernel_size=K, stride=STRIDE, padding=PAD)
    assert out.shape == (N, C_OUT, H, W), out.shape
    # Tolerance loosened because matmul operands are bf16 (accumulation is f32).
    assert jnp.allclose(out, ref, atol=5e-2, rtol=5e-2), float(jnp.max(jnp.abs(out - ref)))

    print("KERNEL_OK")
</pallas_src>

<mosaic_0001>
module attributes {stable_mosaic.version = 11 : i64} {
  func.func @_conv_bn_lrelu_kernel(%arg0: i32, %arg1: memref<1x4x18x18xbf16, #tpu.memory_space<vmem>>, %arg2: memref<8x36xbf16, #tpu.memory_space<vmem>>, %arg3: memref<8x1xf32, #tpu.memory_space<vmem>>, %arg4: memref<1x8x256xf32, #tpu.memory_space<vmem>>) attributes {dimension_semantics = [#tpu.dimension_semantics<parallel>], iteration_bounds = array<i64: 2>, scalar_prefetch = 0 : i64, scratch_operands = 0 : i64, tpu.core_type = #tpu.core_type<tc>, window_params = [{transform_indices = @transform_0, window_bounds = array<i64: 1, 4, 18, 18>}, {pipeline_mode = #tpu.pipeline_mode<synchronous>, transform_indices = @transform_1, window_bounds = array<i64: 8, 36>}, {pipeline_mode = #tpu.pipeline_mode<synchronous>, transform_indices = @transform_2, window_bounds = array<i64: 8, 1>}, {transform_indices = @transform_3, window_bounds = array<i64: 1, 8, 256>}]} {
    %c0 = arith.constant 0 : index
    %c0_0 = arith.constant 0 : index
    %c0_1 = arith.constant 0 : index
    %c0_2 = arith.constant 0 : index
    %0 = vector.load %arg1[%c0, %c0_0, %c0_1, %c0_2] : memref<1x4x18x18xbf16, #tpu.memory_space<vmem>>, vector<1x4x18x18xbf16>
    %1 = vector.shape_cast %0 : vector<1x4x18x18xbf16> to vector<4x18x18xbf16>
    %2 = vector.extract_strided_slice %1 {offsets = [0, 0, 0], sizes = [4, 16, 16], strides = [1, 1, 1]} : vector<4x18x18xbf16> to vector<4x16x16xbf16>
    %3 = vector.extract_strided_slice %1 {offsets = [0, 0, 1], sizes = [4, 16, 16], strides = [1, 1, 1]} : vector<4x18x18xbf16> to vector<4x16x16xbf16>
    %4 = vector.extract_strided_slice %1 {offsets = [0, 0, 2], sizes = [4, 16, 16], strides = [1, 1, 1]} : vector<4x18x18xbf16> to vector<4x16x16xbf16>
    %5 = vector.extract_strided_slice %1 {offsets = [0, 1, 0], sizes = [4, 16, 16], strides = [1, 1, 1]} : vector<4x18x18xbf16> to vector<4x16x16xbf16>
    %6 = vector.extract_strided_slice %1 {offsets = [0, 1, 1], sizes = [4, 16, 16], strides = [1, 1, 1]} : vector<4x18x18xbf16> to vector<4x16x16xbf16>
    %7 = vector.extract_strided_slice %1 {offsets = [0, 1, 2], sizes = [4, 16, 16], strides = [1, 1, 1]} : vector<4x18x18xbf16> to vector<4x16x16xbf16>
    %8 = vector.extract_strided_slice %1 {offsets = [0, 2, 0], sizes = [4, 16, 16], strides = [1, 1, 1]} : vector<4x18x18xbf16> to vector<4x16x16xbf16>
    %9 = vector.extract_strided_slice %1 {offsets = [0, 2, 1], sizes = [4, 16, 16], strides = [1, 1, 1]} : vector<4x18x18xbf16> to vector<4x16x16xbf16>
    %10 = vector.extract_strided_slice %1 {offsets = [0, 2, 2], sizes = [4, 16, 16], strides = [1, 1, 1]} : vector<4x18x18xbf16> to vector<4x16x16xbf16>
    %11 = tpu.concatenate %2, %3, %4, %5, %6, %7, %8, %9, %10 in 0 : vector<4x16x16xbf16>, vector<4x16x16xbf16>, vector<4x16x16xbf16>, vector<4x16x16xbf16>, vector<4x16x16xbf16>, vector<4x16x16xbf16>, vector<4x16x16xbf16>, vector<4x16x16xbf16>, vector<4x16x16xbf16> -> vector<36x16x16xbf16>
    %12 = vector.shape_cast %11 : vector<36x16x16xbf16> to vector<36x256xbf16>
    %c0_3 = arith.constant 0 : index
    %c0_4 = arith.constant 0 : index
    %13 = vector.load %arg2[%c0_3, %c0_4] : memref<8x36xbf16, #tpu.memory_space<vmem>>, vector<8x36xbf16>
    %cst = arith.constant dense<0.000000e+00> : vector<8x256xf32>
    %14 = tpu.matmul %13, %12, %cst {dimension_numbers = #tpu.dot_dimension_numbers<[1], [0], [0], [1], [0, 0, 1, 1], [], []>} : vector<8x36xbf16>, vector<36x256xbf16>, vector<8x256xf32> -> vector<8x256xf32>
    %c0_5 = arith.constant 0 : index
    %c0_6 = arith.constant 0 : index
    %15 = vector.load %arg3[%c0_5, %c0_6] : memref<8x1xf32, #tpu.memory_space<vmem>>, vector<8x1xf32>
    %16 = vector.broadcast %15 : vector<8x1xf32> to vector<8x256xf32>
    %17 = arith.addf %14, %16 : vector<8x256xf32>
    %cst_7 = arith.constant 0.000000e+00 : f32
    %18 = vector.broadcast %cst_7 : f32 to vector<8x256xf32>
    %19 = arith.cmpf oge, %17, %18 : vector<8x256xf32>
    %cst_8 = arith.constant 1.000000e-01 : f32
    %20 = vector.broadcast %cst_8 : f32 to vector<8x256xf32>
    %21 = arith.mulf %20, %17 : vector<8x256xf32>
    %22 = arith.select %19, %17, %21 : vector<8x256xi1>, vector<8x256xf32>
    %c0_9 = arith.constant 0 : index
    %c0_10 = arith.constant 0 : index
    %c0_11 = arith.constant 0 : index
    %23 = vector.load %arg4[%c0_9, %c0_10, %c0_11] : memref<1x8x256xf32, #tpu.memory_space<vmem>>, vector<1x8x256xf32>
    %24 = vector.shape_cast %23 : vector<1x8x256xf32> to vector<8x256xf32>
    %25 = vector.shape_cast %22 : vector<8x256xf32> to vector<1x8x256xf32>
    tpu.vector_store %arg4[%c0_9, %c0_10, %c0_11], %25 {strides = array<i32>} : memref<1x8x256xf32, #tpu.memory_space<vmem>>, vector<1x8x256xf32>,
    return
  }
  func.func @transform_0(%arg0: i32) -> (i32, i32, i32, i32) {
    %c0_i32 = arith.constant 0 : i32
    %c0_i32_0 = arith.constant 0 : i32
    %c0_i32_1 = arith.constant 0 : i32
    %c0_i32_2 = arith.constant 0 : i32
    return %arg0, %c0_i32, %c0_i32_0, %c0_i32_1 : i32, i32, i32, i32
  }
  func.func @transform_1(%arg0: i32) -> (i32, i32) {
    %c0_i32 = arith.constant 0 : i32
    %c0_i32_0 = arith.constant 0 : i32
    %c0_i32_1 = arith.constant 0 : i32
    return %c0_i32, %c0_i32_0 : i32, i32
  }
  func.func @transform_2(%arg0: i32) -> (i32, i32) {
    %c0_i32 = arith.constant 0 : i32
    %c0_i32_0 = arith.constant 0 : i32
    %c0_i32_1 = arith.constant 0 : i32
    return %c0_i32, %c0_i32_0 : i32, i32
  }
  func.func @transform_3(%arg0: i32) -> (i32, i32, i32) {
    %c0_i32 = arith.constant 0 : i32
    %c0_i32_0 = arith.constant 0 : i32
    %c0_i32_1 = arith.constant 0 : i32
    return %arg0, %c0_i32, %c0_i32_0 : i32, i32, i32
  }
}

</mosaic_0001>

<bundles_post_ra>
// kernel: tpu_custom_call.1
= control target key start
LH: loop header
LB: loop body
LE: loop exit
PB: predicated region body
PF: predicated region fallthrough
CT: control target
= control target key end

     0   :  { %8 = vsyncpa [#allocation3], 0  ;;  %s3068_s0 = inlined_call_operand.vmem [shape: bf16[2,4,18,18], index: 0, kind: input, shape index: {}]   ;;  %s3069_s1 = inlined_call_operand.vmem [shape: bf16[8,36], index: 1, kind: input, shape index: {}]   ;;  %s3070_s2 = inlined_call_operand.vmem [shape: f32[8,1], index: 2, kind: input, shape index: {}]   ;;  %s3071_s3 = inlined_call_operand.hbm [shape: f32[2,8,256], index: 3, kind: output, shape index: {}]  }
   0x1   :  { %10 = vsyncpa [#allocation3 + $0x1], 0  ;;  %s2134_s12 = smov 0   ;;  %s2136_s13 = smov 0  }
   0x2   :  { %s2138_s14 = smov 0   ;;  %s2140_s15 = smov 0  }
   0x3 LB: > { %s2155_s16 = sadd.s32 4294967295, %s2099_s15   ;;  %s1896_s17 = sadd.s32 4294967294, %s2099_s15   ;;  %s2099_s15 = sphi %s2140_s15, %s3143_s15   ;;  %s2095_s14 = sphi %s2138_s14, %s3142_s14   ;;  %s2091_s13 = sphi %s2136_s13, %s3141_s13   ;;  %s2087_s12 = sphi %s2134_s12, %s3140_s12  }
   0x4   : > { %s2159_s18 = sadd.s32 1, %s2099_s15   ;;  %s91_s19 = sadd.s32 1, %s2095_s14 }
   0x5   : > { %s88_s20 = ssub.s32 %s2099_s15, %s2159_s18  ;;  %p101_p0 = scmp.ne.s32.totalorder %s2095_s14, %s2091_s13 }
   0x6   : > { %p89_p1 = scmp.eq.s32.totalorder %s88_s20, 0  ;;  %p102_p2 = scmp.eq.s32.totalorder %s2155_s16, 1 }
   0x7   : > { %p107_p3 = scmp.ne.s32.totalorder %s2091_s13, %s2087_s12  ;;  %p108_p4 = scmp.eq.s32.totalorder %s1896_s17, 1 }
   0x8   : > { %s2170_s21 = scalar_select %p89_p1, %s2095_s14, %s91_s19  }
   0x9   : > { %p2172_p5 = por %p102_p2, %p101_p0  ;;  %p2176_p6 = por %p108_p4, %p107_p3 }
   0xa   : > { %p1899_p7 = scmp.ge.s32.totalorder %s2099_s15, 1  ;;  %p140_p8 = scmp.lt.s32.totalorder %s2099_s15, 3 }
   0xc   : > { %p141_p9 = pnand %p1899_p7, %p140_p8 }
   0xe   : > { %144 = sbr.rel (%p141_p9) target bundleno = 649 (0x289), region = 32 }
  0x13   : > { %p164_p10 = scmp.lt.s32.totalorder %s2155_s16, 1  ;;  %vm357_vm0 = vcmask 1042432   ;;  %vm358_vm1 = vcmask 1046532   ;;  %s2101_s29 = smov 126   ;;  %vm222_vm3 = vsmask.f32 3328 }
  0x14   : > { %vm2189_vm2 = vmor %vm357_vm0, %vm358_vm1  ;;  %vm223_vm4 = vsmask.f32 7440  ;;  %s2102_s30 = smov 127   ;;  %s2105_s4 = smov 32   ;;  %vm1656_vm6 = vcmask 130048   ;;  %vm1666_vm7 = vcmask 261120  }
  0x15   : > { %s165_s24 = scalar_select %p164_p10, %s2155_s16, 1  ;;  %vm2291_vm5 = vmor %vm222_vm3, %vm223_vm4  ;;  %vm1673_vm8 = vcmask 392192   ;;  %vm1680_vm9 = vcmask 523264   ;;  %vm1687_vm10 = vcmask 654336   ;;  %vm1694_vm11 = vcmask 785408  }
  0x16   : > { %s2106_s5 = smov 64   ;;  %s2107_s6 = smov 96   ;;  %vm1701_vm12 = vcmask 916480   ;;  %vm1768_vm13 = vcmask 1041408   ;;  %vm1764_vm14 = vcmask 293888  }
  0x17   : > { %s1986_s25 = smul.u32 48, %s165_s24  ;;  %s2108_s7 = smov 16  }
  0x18   : > { %s2109_s8 = smov 48   ;;  %s2110_s9 = smov 80  }
  0x19   : > { %s2187_s28 = scalar_lea.vmem %s3068_s0, %s1986_s25  ;;  %s2111_s10 = smov 112  }
  0x1a   : > { %v2194_v1 = vld [vmem:[%s2187_s28 + $0xc] sm:$0xf]  ;;  %v2197_v2 = vld [vmem:[%s2187_s28 + $0x10] sm:$0xf]  ;;  %v2200_v3 = vld [vmem:[%s2187_s28] sm:$0xf] }
  0x1b   : > { %v1903_v4 = vrot.slane %v2194_v1, 9  ;;  %v369_v5 = vrot.slane %v2197_v2, 5  ;;  %v2205_v6 = vld [vmem:[%s2187_s28 + $0x4] sm:$0xf]  ;;  %v1902_v7 = vrot.slane %v2200_v3, 9  ;;  %v259_v11 = vshll.u32 %v2197_v2, 16 }
  0x1c   : > { %v362_v8 = vrot.slane %v2205_v6, 5  ;;  %v175_v9 = vld [vmem:[%s2187_s28 + $0x14] sm:$0x1]  ;;  %v2211_v10 = vld [vmem:[%s2187_s28 + $0x18] sm:$0xf]  ;;  %v263_v24 = vshrl.u32 %v2197_v2, 16 }
  0x1d   : > { %v2216_v12 = vsel %vm2189_vm2, %v1903_v4, %v369_v5  ;;  %v371_v13 = vrot.slane %v369_v5, 4  ;;  %v372_v14 = vrot.slane %v175_v9, 5  ;;  %v2219_v15 = vld [vmem:[%s2187_s28 + $0x1c] sm:$0xf]  ;;  %v1904_v16 = vrot.slane %v2211_v10, 9  ;;  %s161_s24 = sand.u32 1, %s2091_s13  }
  0x1e   : > { %408 = vrot.lane.b32.xlu1 %v2216_v12, %s2101_s29  ;;  %v2226_v17 = vsel %vm2189_vm2, %v1902_v7, %v362_v8  ;;  %v376_v18 = vrot.slane %v2219_v15, 5  ;;  %v178_v19 = vld [vmem:[%s2187_s28 + $0x20] sm:$0x1]  ;;  %v2231_v20 = vld [vmem:[%s2187_s28 + $0x24] sm:$0xf]  ;;  %v364_v32 = vrot.slane %v362_v8, 4 }
  0x1f   : > { %404 = vrot.lane.b32.xlu0 %v2226_v17, %s2101_s29  ;;  %v2237_v21 = vsel %vm2189_vm2, %v371_v13, %v372_v14  ;;  %v379_v22 = vrot.slane %v178_v19, 5  ;;  %v2240_v23 = vld [vmem:[%s2187_s28 + $0x28] sm:$0xf]  ;;  %v1905_v27 = vrot.slane %v2231_v20, 9  ;;  %v181_v29 = vld [vmem:[%s2187_s28 + $0x2c] sm:$0x1] }
  0x20   : > { %v2245_v25 = vsel %vm2189_vm2, %v1904_v16, %v376_v18  ;;  %v378_v26 = vrot.slane %v376_v18, 4  ;;  %v383_v28 = vrot.slane %v2240_v23, 5  ;;  %v386_v30 = vrot.slane %v181_v29, 5  ;;  %v172_v31 = vld [vmem:[%s2187_s28 + $0x8] sm:$0x1]  ;;  %s1900_s25 = sshll.u32 %s161_s24, 4 }
  0x21   : > { %v2251_v33 = vrot.slane %v259_v11, 5  ;;  %v365_v35 = vrot.slane %v172_v31, 5  ;;  %v265_v37 = vrot.slane %v263_v24, 4  ;;  %v269_v38 = vshll.u32 %v175_v9, 16  ;;  %s1985_s26 = sshll.u32 %s2155_s16, 8  ;;  %s163_s27 = scalar_lea.vmem [#allocation2], %s1900_s25 }
  0x22   : > { %410 = vrot.lane.b32.xlu1 %v2237_v21, %s2101_s29  ;;  %v385_v34 = vrot.slane %v383_v28, 4  ;;  %v2259_v36 = vsel %vm2189_vm2, %v378_v26, %v379_v22  ;;  %v2265_v39 = vsel %vm2189_vm2, %v1905_v27, %v383_v28  ;;  %v235_v40 = vshll.u32 %v2205_v6, 16  ;;  %s1837_s28 = sshll.u32 %s163_s27, 4  ;;  %s2113_s16 = smov [#allocation2]   ;;  %s1838_s28 = int_to_ptr.vmem [resolvable:$true] %s1837_s28 }
  0x23   : > { %412 = vrot.lane.b32.xlu0 %v2245_v25, %s2101_s29  ;;  %v239_v41 = vshrl.u32 %v2205_v6, 16  ;;  %v2275_v43 = vsel %vm2189_vm2, %v364_v32, %v365_v35  ;;  %v266_v44 = vor.u32 %v265_v37, %v2251_v33  ;;  %v271_v45 = vrot.slane %v269_v38, 5 }
  0x24   : > { %v2271_v42 = vsel %vm2189_vm2, %v385_v34, %v386_v30  ;;  %v2280_v46 = vrot.slane %v235_v40, 5  ;;  %v245_v48 = vshll.u32 %v172_v31, 16  ;;  %v307_v49 = vshll.u32 %v2240_v23, 16 }
  0x25   : > { %v241_v47 = vrot.slane %v239_v41, 4  ;;  %v267_v50 = vrot.slane %v266_v44, 4  ;;  %v311_v51 = vshrl.u32 %v2240_v23, 16  ;;  %v317_v52 = vshll.u32 %v181_v29, 16 }
  0x26   : > { %414 = vrot.lane.b32.xlu1 %v2259_v36, %s2101_s29  ;;  %v283_v53 = vshll.u32 %v2219_v15, 16  ;;  %v247_v56 = vrot.slane %v245_v48, 5  ;;  %v2296_v57 = vrot.slane %v307_v49, 5  ;;  %v287_v58 = vshrl.u32 %v2219_v15, 16 }
  0x27   : > { %416 = vrot.lane.b32.xlu0 %v2265_v39, %s2101_s29  ;;  %v242_v55 = vor.u32 %v241_v47, %v2280_v46  ;;  %v313_v59 = vrot.slane %v311_v51, 4  ;;  %v293_v63 = vshll.u32 %v178_v19, 16  ;;  %v2311_v0 = vsel %vm2291_vm5, %v267_v50, %v271_v45 }
  0x28   : > { %v2301_v60 = vrot.slane %v283_v53, 5  ;;  %v289_v62 = vrot.slane %v287_v58, 4  ;;  %v319_v5 = vrot.slane %v317_v52, 5  ;;  %v645_v16 = vshrl.u32 %v2237_v21, 16 }
  0x29   : > { %v243_v61 = vrot.slane %v242_v55, 4  ;;  %v314_v4 = vor.u32 %v313_v59, %v2296_v57  ;;  %v295_v9 = vrot.slane %v293_v63, 5  ;;  %v644_v18 = vshrl.u32 %v2275_v43, 16 }
  0x2a   : > { %418 = vrot.lane.b32.xlu1 %v2271_v42, %s2101_s29  ;;  %v290_v8 = vor.u32 %v289_v62, %v2301_v60  ;;  %v250_v22 = vshrl.u32 %v2194_v1, 16  ;;  %v253_v26 = vshll.u32 %v2194_v1, 16  ;;  %v226_v27 = vshrl.u32 %v2200_v3, 16 }
  0x2b   : > { %406 = vrot.lane.b32.xlu0 %v2275_v43, %s2101_s29  ;;  %v2316_v7 = vsel %vm2291_vm5, %v243_v61, %v247_v56  ;;  %v315_v11 = vrot.slane %v314_v4, 4  ;;  %v652_v29 = vshrl.u32 %v2259_v36, 16  ;;  %v653_v30 = vshrl.u32 %v2271_v42, 16 }
  0x2c   : > { %v291_v13 = vrot.slane %v290_v8, 4  ;;  %v229_v31 = vshll.u32 %v2200_v3, 16  ;;  %v2345_v32 = vpack.i.b16 %v645_v16, %v644_v18  ;;  %v252_v34 = vrot.slane %v250_v22, 4 }
  0x2d   : > { %v2325_v14 = vsel %vm2291_vm5, %v315_v11, %v319_v5  ;;  %v255_v35 = vrot.slane %v253_v26, 5  ;;  %v228_v37 = vrot.slane %v226_v27, 4  ;;  %v298_v38 = vshrl.u32 %v2231_v20, 16 }
  0x2e   : > { %327 = vrot.lane.b32.xlu1 %v2311_v0, %s2102_s30  ;;  %v2331_v19 = vsel %vm2291_vm5, %v291_v13, %v295_v9  ;;  %v301_v40 = vshll.u32 %v2231_v20, 16  ;;  %v231_v45 = vrot.slane %v229_v31, 5  ;;  %v274_v47 = vshrl.u32 %v2211_v10, 16 }
  0x2f   : > { %323 = vrot.lane.b32.xlu0 %v2316_v7, %s2102_s30  ;;  %v277_v48 = vshll.u32 %v2211_v10, 16  ;;  %v2361_v49 = vpack.i.b16 %v653_v30, %v652_v29  ;;  %v256_v50 = vor.u32 %v255_v35, %v252_v34  ;;  %v300_v52 = vrot.slane %v298_v38, 4 }
  0x30   : > { %v303_v53 = vrot.slane %v301_v40, 5  ;;  %v232_v55 = vor.u32 %v231_v45, %v228_v37  ;;  %v276_v56 = vrot.slane %v274_v47, 4  ;;  %v512_v16 = vshrl.u32 %v2226_v17, 16 }
  0x31   : > { %v279_v59 = vrot.slane %v277_v48, 5  ;;  %v257_v61 = vrot.slane %v256_v50, 4  ;;  %v521_v26 = vshrl.u32 %v2265_v39, 16  ;;  %v2431_v30 = vpack.i.b16 %v263_v24, %v239_v41 }
  0x32   : > { %335 = vrot.lane.b32.xlu1 %v2325_v14, %s2102_s30  ;;  %v304_v62 = vor.u32 %v303_v53, %v300_v52  ;;  %v233_v63 = vrot.slane %v232_v55, 4  ;;  %v597_v31 = vshrl.u32 %v2311_v0, 16  ;;  %v596_v34 = vshrl.u32 %v2316_v7, 16 }
  0x33   : > { %331 = vrot.lane.b32.xlu0 %v2331_v19, %s2102_s30  ;;  %v280_v4 = vor.u32 %v279_v59, %v276_v56  ;;  %v2382_v5 = vsel %vm2291_vm5, %v257_v61, %v2251_v33  ;;  %v513_v33 = vshrl.u32 %v2216_v12, 16  ;;  %v2443_v35 = vpack.i.b16 %v311_v51, %v287_v58 }
  0x34   : > { %v305_v8 = vrot.slane %v304_v62, 4  ;;  %v2387_v9 = vsel %vm2291_vm5, %v233_v63, %v2280_v46  ;;  %v605_v41 = vshrl.u32 %v2325_v14, 16  ;;  %v604_v37 = vshrl.u32 %v2331_v19, 16 }
  0x35   : > { %v281_v11 = vrot.slane %v280_v4, 4  ;;  %v2413_v29 = vpack.i.b16 %v513_v33, %v512_v16  ;;  %v2453_v40 = vpack.i.b16 %v597_v31, %v596_v34  ;;  %v2471_v45 = vpack.i.b16 %v250_v22, %v226_v27 }
  0x36   : > { %343 = vrot.lane.b32.xlu1 %v2311_v0, %s2101_s29  ;;  %v2396_v13 = vsel %vm2291_vm5, %v305_v8, %v2296_v57  ;;  %v520_v57 = vshrl.u32 %v2245_v25, 16  ;;  %v2461_v58 = vpack.i.b16 %v605_v41, %v604_v37  ;;  %v465_v48 = vshrl.u32 %v2382_v5, 16 }
  0x37   : > { %339 = vrot.lane.b32.xlu0 %v2316_v7, %s2101_s29  ;;  %3094 = vst [vmem:[#allocation5_spill] sm:$0xff] %v2396_v13  ;;  %v2403_v46 = vsel %vm2291_vm5, %v281_v11, %v2301_v60  ;;  %v464_v50 = vshrl.u32 %v2387_v9, 16  ;;  %v2483_v52 = vpack.i.b16 %v298_v38, %v274_v47  ;;  %v473_v27 = vshrl.u32 %v2396_v13, 16 }
  0x38   : > { %3095 = vst [vmem:[#allocation6_spill] sm:$0xff] %v2403_v46  ;;  %v2421_v60 = vpack.i.b16 %v521_v26, %v520_v57  ;;  %v472_v53 = vshrl.u32 %v2403_v46, 16  ;;  %v2103_v59 = vmov 1983009808   ;;  %v688_v62 = vlaneseq }
  0x39   : > { %v2493_v55 = vpack.i.b16 %v465_v48, %v464_v50  ;;  %v686_v61 = vunpack.c.l.s4 %v2103_v59  ;;  %v2104_v26 = vmov 1934713408  }
  0x3a   : > { %351 = vrot.lane.b32.xlu1 %v2325_v14, %s2101_s29  ;;  %v2501_v47 = vpack.i.b16 %v473_v27, %v472_v53  ;;  %v689_v33 = vshrl.u32 %v688_v62, 7  ;;  %v703_v31 = vunpack.c.l.s4 %v2104_v26 }
  0x3b   : > { %347 = vrot.lane.b32.xlu0 %v2331_v19, %s2101_s29  ;;  %v687_v11 = vunpack.c.0.s8 %v686_v61 }
  0x3c   : > { %3096 = vst [vmem:[#allocation7_spill] sm:$0xff] %v2501_v47  ;;  %v704_v50 = vunpack.c.0.s8 %v703_v31  ;;  %v3104_v47 = vpack.i.b16 %v2237_v21, %v2275_v43 }
  0x3d   : > { %v2515_v41 = vsub.s32 %v687_v11, %v689_v33 }
  0x3e   : > { %394 = vrot.lane.b32.xlu1 %v2237_v21, %s2102_s30 }
  0x3f   : > { %390 = vrot.lane.b32.xlu0 %v2275_v43, %s2102_s30 }
  0x42   : > { %402 = vrot.lane.b32.xlu1 %v2271_v42, %s2102_s30 }
  0x43   : > { %398 = vrot.lane.b32.xlu0 %v2259_v36, %s2102_s30 }
  0x46   : > { %325 = vrot.lane.b32.xlu1 %v2382_v5, %s2102_s30 }
  0x47   : > { %321 = vrot.lane.b32.xlu0 %v2387_v9, %s2102_s30 }
  0x4a   : > { %333 = vrot.lane.b32.xlu1 %v2396_v13, %s2102_s30 }
  0x4b   : > { %329 = vrot.lane.b32.xlu0 %v2403_v46, %s2102_s30 }
  0x4e   : > { %341 = vrot.lane.b32.xlu1 %v2382_v5, %s2101_s29 }
  0x4f   : > { %337 = vrot.lane.b32.xlu0 %v2387_v9, %s2101_s29 }
  0x52   : > { %349 = vrot.lane.b32.xlu1 %v2396_v13, %s2101_s29 }
  0x53   : > { %345 = vrot.lane.b32.xlu0 %v2403_v46, %s2101_s29 }
  0x56   : > { %392 = vrot.lane.b32.xlu1 %v2216_v12, %s2102_s30 }
  0x57   : > { %388 = vrot.lane.b32.xlu0 %v2226_v17, %s2102_s30 }
  0x5a   : > { %400 = vrot.lane.b32.xlu1 %v2265_v39, %s2102_s30 }
  0x5b   : > { %396 = vrot.lane.b32.xlu0 %v2245_v25, %s2102_s30 }
  0x5e   : > { %196 = vrot.lane.b32.xlu1 %v2197_v2, %s2102_s30 }
  0x5f   : > { %192 = vrot.lane.b32.xlu0 %v2205_v6, %s2102_s30 }
  0x62   : > { %204 = vrot.lane.b32.xlu1 %v2240_v23, %s2102_s30 }
  0x63   : > { %200 = vrot.lane.b32.xlu0 %v2219_v15, %s2102_s30 }
  0x66   : > { %212 = vrot.lane.b32.xlu1 %v2197_v2, %s2101_s29 }
  0x67   : > { %208 = vrot.lane.b32.xlu0 %v2205_v6, %s2101_s29 }
  0x6a   : > { %220 = vrot.lane.b32.xlu1 %v2240_v23, %s2101_s29 }
  0x6b   : > { %216 = vrot.lane.b32.xlu0 %v2219_v15, %s2101_s29 }
  0x6e   : > { %194 = vrot.lane.b32.xlu1 %v2194_v1, %s2102_s30 }
  0x6f   : > { %190 = vrot.lane.b32.xlu0 %v2200_v3, %s2102_s30 }
  0x72   : > { %202 = vrot.lane.b32.xlu1 %v2231_v20, %s2102_s30 }
  0x73   : > { %198 = vrot.lane.b32.xlu0 %v2211_v10, %s2102_s30 }
  0x76   : > { %210 = vrot.lane.b32.xlu1 %v2194_v1, %s2101_s29 }
  0x77   : > { %206 = vrot.lane.b32.xlu0 %v2200_v3, %s2101_s29 }
  0x7a   : > { %218 = vrot.lane.b32.xlu1 %v2231_v20, %s2101_s29 }
  0x7b   : > { %214 = vrot.lane.b32.xlu0 %v2211_v10, %s2101_s29 }
  0x90   : > { %v409_v56 = vpop.permute.xlu1 %408 }
  0x91   : > { %v544_v63 = vshrl.u32 %v409_v56, 16  ;;  %v405_v4 = vpop.permute.xlu0 %404 }
  0x92   : > { %v543_v8 = vshrl.u32 %v405_v4, 16  ;;  %v542_v37 = vpack.i.b16 %v409_v56, %v405_v4 }
  0x94   : > { %v545_v16 = vpack.i.b16 %v544_v63, %v543_v8  ;;  %v411_v57 = vpop.permute.xlu1 %410  ;;  %v963_v22 = vrot.slane %v542_v37, %v2515_v41  ;;  %v2519_v63 = vsub.s32 %v704_v50, %v689_v33 }
  0x95   : > { %v413_v34 = vpop.permute.xlu0 %412  ;;  %v676_v8 = vshrl.u32 %v411_v57, 16 }
  0x96   : > { %v549_v53 = vshrl.u32 %v413_v34, 16  ;;  %v2522_v56 = vrot.slane %v545_v16, %v2515_v41 }
  0x98   : > { %v415_v48 = vpop.permute.xlu1 %414  ;;  %3097 = vst [vmem:[#allocation8_spill] sm:$0xff] %v2522_v56 }
  0x99   : > { %v417_v27 = vpop.permute.xlu0 %416  ;;  %v681_v26 = vshrl.u32 %v415_v48, 16 }
  0x9a   : > { %v548_v38 = vpack.i.b16 %v417_v27, %v413_v34  ;;  %v550_v59 = vshrl.u32 %v417_v27, 16 }
  0x9c   : > { %v551_v51 = vpack.i.b16 %v550_v59, %v549_v53  ;;  %v971_v61 = vrot.slane %v548_v38, %v2515_v41  ;;  %v419_v62 = vpop.permute.xlu1 %418 }
  0x9d   : > { %v680_v24 = vpack.i.b16 %v419_v62, %v415_v48  ;;  %v682_v11 = vshrl.u32 %v419_v62, 16  ;;  %v407_v54 = vpop.permute.xlu0 %406 }
  0x9e   : > { %v972_v4 = vcombine.low %v963_v22, %v971_v61  ;;  %v2525_v31 = vrot.slane %v551_v51, %v2515_v41  ;;  %v674_v34 = vpack.i.b16 %v411_v57, %v407_v54  ;;  %v973_v37 = vcombine.high %v963_v22, %v971_v61 }
  0x9f   : > { %v683_v27 = vpack.i.b16 %v682_v11, %v681_v26  ;;  %v1311_v38 = vrot.slane %v680_v24, %v2515_v41  ;;  %v675_v53 = vshrl.u32 %v407_v54, 16 }
  0xa0   : > { %3098 = vst [vmem:[#allocation9_spill] sm:$0xff] %v2525_v31  ;;  %v1303_v50 = vrot.slane %v674_v34, %v2515_v41  ;;  %v2533_v16 = vpop.permute.xlu1 %327  ;;  %v2536_v59 = vrot.slane %v972_v4, %v2519_v63  ;;  %v987_v26 = vrot.slane %v973_v37, %v2519_v63 }
  0xa1   : > { %v2539_v51 = vrot.slane %v683_v27, %v2515_v41  ;;  %v677_v22 = vpack.i.b16 %v676_v8, %v675_v53  ;;  %v2541_v57 = vpop.permute.xlu0 %323 }
  0xa2   : > { %3099 = vst [vmem:[#allocation10_spill] sm:$0xff] %v2536_v59  ;;  %v1312_v54 = vcombine.low %v1303_v50, %v1311_v38  ;;  %v1313_v24 = vcombine.high %v1303_v50, %v1311_v38  ;;  %v1963_v62 = vcombine.high %v2536_v59, %v2536_v59  ;;  %v1920_v53 = vcombine.low %v987_v26, %v987_v26 }
  0xa3   : > { %3100 = vst [vmem:[#allocation11_spill] sm:$0xff] %v2539_v51  ;;  %v2544_v61 = vrot.slane %v677_v22, %v2515_v41  ;;  %v1969_v8 = vcombine.high %v987_v26, %v987_v26 }
  0xa4   : > { %v2549_v11 = vpop.permute.xlu1 %335  ;;  %v2552_v4 = vrot.slane %v1312_v54, %v2519_v63  ;;  %1413 = vrot.lane.b32.xlu0 %v1963_v62, %s2105_s4  ;;  %v2564_v37 = vrot.slane %v1313_v24, %v2519_v63 }
  0xa5   : > { %3101 = vst [vmem:[#allocation12_spill] sm:$0xff] %v2544_v61  ;;  %v2557_v34 = vpop.permute.xlu0 %331  ;;  %v1346_v27 = vcombine.low %v2544_v61, %v2539_v51 }
  0xa6   : > { %3102 = vst [vmem:[#allocation13_spill] sm:$0xff] %v2552_v4  ;;  %v1975_v38 = vcombine.high %v2552_v4, %v2552_v4  ;;  %3103 = vst [vmem:[#allocation14_spill] sm:$0xff] %v2564_v37  ;;  %v1944_v54 = vcombine.low %v2564_v37, %v2564_v37  ;;  %v618_v33 = vpack.i.b16 %v2549_v11, %v2557_v34 }
  0xa7   : > { %v1354_v62 = vrot.slane %v1346_v27, %v2519_v63 }
  0xa8   : > { %1559 = vrot.lane.b32.xlu1 %v1975_v38, %s2105_s4  ;;  %v2567_v50 = vpop.permute.xlu1 %343  ;;  %1451 = vrot.lane.b32.xlu0 %v1920_v53, %s2106_s5 }
  0xa9   : > { %v2570_v22 = vpop.permute.xlu0 %339  ;;  %v1935_v48 = vcombine.low %v1354_v62, %v1354_v62  ;;  %v1978_v59 = vcombine.high %v1354_v62, %v1354_v62 }
  0xaa   : > { %v626_v27 = vpack.i.b16 %v2567_v50, %v2570_v22 }
  0xac   : > { %1597 = vrot.lane.b32.xlu1 %v1944_v54, %s2106_s5  ;;  %v2576_v24 = vpop.permute.xlu1 %351  ;;  %1489 = vrot.lane.b32.xlu0 %v1969_v8, %s2107_s6  ;;  %v610_v54 = vpack.i.b16 %v2533_v16, %v2541_v57 }
  0xad   : > { %v2579_v38 = vpop.permute.xlu0 %347 }
  0xae   : > { %v634_v53 = vpack.i.b16 %v2576_v24, %v2579_v38  ;;  %v1160_v51 = vcombine.low %v610_v54, %v626_v27  ;;  %v621_v54 = vshrl.u32 %v2549_v11, 16 }
  0xb0   : > { %1540 = vrot.lane.b32.xlu1 %v1935_v48, %s2108_s7  ;;  %v395_v26 = vpop.permute.xlu1 %394  ;;  %v1168_v44 = vcombine.low %v618_v33, %v634_v53 }
  0xb1   : > { %v661_v8 = vshrl.u32 %v395_v26, 16  ;;  %v391_v18 = vpop.permute.xlu0 %390 }
  0xb2   : > { %v658_v28 = vpack.i.b16 %v395_v26, %v391_v18  ;;  %v660_v4 = vshrl.u32 %v391_v18, 16  ;;  %v2592_v48 = vrot.slane %v1168_v44, %v2515_v41  ;;  %v2598_v18 = vrot.slane %v1160_v51, %v2515_v41 }
  0xb4   : > { %v662_v61 = vpack.i.b16 %v661_v8, %v660_v4  ;;  %1578 = vrot.lane.b32.xlu1 %v1978_v59, %s2109_s8  ;;  %v403_v37 = vpop.permute.xlu1 %402  ;;  %v1228_v46 = vcombine.low %v3104_v47, %v658_v28  ;;  %3105 = vst [vmem:[#allocation15_spill] sm:$0xff] %v2598_v18  ;;  %v3106_v59 = vpack.i.b16 %v2271_v42, %v2259_v36  ;;  %v620_v42 = vshrl.u32 %v2557_v34, 16 }
  0xb5   : > { %v669_v31 = vshrl.u32 %v403_v37, 16  ;;  %v399_v56 = vpop.permute.xlu0 %398  ;;  %v1176_v21 = vcombine.low %v2598_v18, %v2592_v48 }
  0xb6   : > { %v666_v13 = vpack.i.b16 %v403_v37, %v399_v56  ;;  %v668_v33 = vshrl.u32 %v399_v56, 16  ;;  %v1262_v4 = vcombine.low %v2345_v32, %v662_v61  ;;  %v2611_v43 = vrot.slane %v1228_v46, %v2515_v41 }
  0xb8   : > { %v670_v62 = vpack.i.b16 %v669_v31, %v668_v33  ;;  %v1236_v53 = vcombine.low %v3106_v59, %v666_v13  ;;  %v2604_v27 = vpop.permute.xlu1 %325  ;;  %3107 = vst [vmem:[#allocation16_spill] sm:$0xff] %v2611_v43  ;;  %v2618_v47 = vrot.slane %v1262_v4, %v2515_v41  ;;  %v2632_v31 = vrot.slane %v1176_v21, %v2519_v63 }
  0xb9   : > { %v2606_v44 = vpop.permute.xlu0 %321  ;;  %v629_v33 = vshrl.u32 %v2567_v50, 16  ;;  %v628_v4 = vshrl.u32 %v2570_v22, 16  ;;  %v636_v59 = vshrl.u32 %v2579_v38, 16  ;;  %v613_v21 = vshrl.u32 %v2533_v16, 16 }
  0xba   : > { %v2614_v28 = vrot.slane %v1236_v53, %v2515_v41  ;;  %v1270_v32 = vcombine.low %v2361_v49, %v670_v62  ;;  %3109 = vst [vmem:[#allocation18_spill] sm:$0xff] %v2632_v31  ;;  %v637_v62 = vshrl.u32 %v2576_v24, 16 }
  0xbc   : > { %3108 = vst [vmem:[#allocation17_spill] sm:$0xff] %v2614_v28  ;;  %v1244_v36 = vcombine.low %v2611_v43, %v2614_v28  ;;  %v2625_v13 = vrot.slane %v1270_v32, %v2515_v41  ;;  %v2627_v56 = vpop.permute.xlu1 %333  ;;  %v612_v32 = vshrl.u32 %v2541_v57, 16  ;;  %v638_v24 = vpack.i.b16 %v637_v62, %v636_v59 }
  0xbd   : > { %v2629_v46 = vpop.permute.xlu0 %329  ;;  %v478_v57 = vpack.i.b16 %v2604_v27, %v2606_v44  ;;  %v556_v28 = vpack.i.b16 %v2240_v23, %v2219_v15  ;;  %v420_v62 = vpack.i.b16 %v2194_v1, %v2200_v3  ;;  %v424_v59 = vpack.i.b16 %v2231_v20, %v2211_v10 }
  0xbe   : > { %v2635_v49 = vrot.slane %v1244_v36, %v2519_v63  ;;  %v486_v50 = vpack.i.b16 %v2627_v56, %v2629_v46  ;;  %v614_v51 = vpack.i.b16 %v613_v21, %v612_v32  ;;  %v481_v32 = vshrl.u32 %v2604_v27, 16 }
  0xbf   : > { %v488_v27 = vshrl.u32 %v2629_v46, 16  ;;  %v3113_v15 = vpack.i.b16 %v2197_v2, %v2205_v6 }
  0xc0   : > { %3110 = vst [vmem:[#allocation19_spill] sm:$0xff] %v2635_v49  ;;  %v2641_v37 = vpop.permute.xlu1 %341  ;;  %v1974_v26 = vcombine.high %v2632_v31, %v2635_v49  ;;  %v622_v31 = vpack.i.b16 %v621_v54, %v620_v42 }
  0xc1   : > { %v2647_v8 = vpop.permute.xlu0 %337 }
  0xc2   : > { %1557 = vrot.lane.b32.xlu1 %v1974_v26, %s2105_s4  ;;  %v630_v26 = vpack.i.b16 %v629_v33, %v628_v4  ;;  %v494_v22 = vpack.i.b16 %v2641_v37, %v2647_v8  ;;  %v1202_v21 = vcombine.low %v622_v31, %v638_v24 }
  0xc4   : > { %v350_v53 = vpop.permute.xlu1 %349  ;;  %v1194_v43 = vcombine.low %v614_v51, %v630_v26  ;;  %v820_v18 = vcombine.low %v478_v57, %v494_v22  ;;  %v3111_v51 = vpack.i.b16 %v2216_v12, %v2226_v17  ;;  %v480_v57 = vshrl.u32 %v2606_v44, 16 }
  0xc5   : > { %v346_v36 = vpop.permute.xlu0 %345  ;;  %v3112_v44 = vpack.i.b16 %v2265_v39, %v2245_v25 }
  0xc6   : > { %v502_v61 = vpack.i.b16 %v350_v53, %v346_v36  ;;  %v482_v25 = vpack.i.b16 %v481_v32, %v480_v57 }
  0xc8   : > { %v393_v38 = vpop.permute.xlu1 %392  ;;  %v828_v11 = vcombine.low %v486_v50, %v502_v61  ;;  %v505_v61 = vshrl.u32 %v350_v53, 16  ;;  %v504_v50 = vshrl.u32 %v346_v36, 16  ;;  %v497_v53 = vshrl.u32 %v2641_v37, 16 }
  0xc9   : > { %v529_v49 = vshrl.u32 %v393_v38, 16  ;;  %v389_v34 = vpop.permute.xlu0 %388  ;;  %v496_v36 = vshrl.u32 %v2647_v8, 16 }
  0xca   : > { %v526_v33 = vpack.i.b16 %v393_v38, %v389_v34  ;;  %v528_v4 = vshrl.u32 %v389_v34, 16  ;;  %v2674_v42 = vrot.slane %v828_v11, %v2515_v41  ;;  %v489_v34 = vshrl.u32 %v2627_v56, 16 }
  0xcb   : > { %v2686_v11 = vrot.slane %v1194_v43, %v2515_v41  ;;  %v506_v12 = vpack.i.b16 %v505_v61, %v504_v50  ;;  %v2697_v50 = vrot.slane %v1202_v21, %v2515_v41 }
  0xcc   : > { %v401_v16 = vpop.permute.xlu1 %400  ;;  %v530_v54 = vpack.i.b16 %v529_v49, %v528_v4  ;;  %v888_v26 = vcombine.low %v3111_v51, %v526_v33  ;;  %v827_v49 = vrot.slane %v820_v18, %v2515_v41  ;;  %v490_v39 = vpack.i.b16 %v489_v34, %v488_v27 }
  0xcd   : > { %v537_v22 = vshrl.u32 %v401_v16, 16  ;;  %v397_v38 = vpop.permute.xlu0 %396  ;;  %v1210_v27 = vcombine.low %v2686_v11, %v2697_v50 }
  0xce   : > { %v534_v31 = vpack.i.b16 %v401_v16, %v397_v38  ;;  %v536_v24 = vshrl.u32 %v397_v38, 16  ;;  %v836_v16 = vcombine.low %v827_v49, %v2674_v42  ;;  %v895_v46 = vrot.slane %v888_v26, %v2515_v41 }
  0xcf   : > { %v922_v37 = vcombine.low %v2413_v29, %v530_v54 }
  0xd0   : > { %v538_v17 = vpack.i.b16 %v537_v22, %v536_v24  ;;  %v896_v33 = vcombine.low %v3112_v44, %v534_v31  ;;  %v197_v56 = vpop.permute.xlu1 %196  ;;  %v498_v22 = vpack.i.b16 %v497_v53, %v496_v36  ;;  %v837_v24 = vcombine.high %v827_v49, %v2674_v42 }
  0xd1   : > { %v565_v4 = vshrl.u32 %v197_v56, 16  ;;  %v193_v8 = vpop.permute.xlu0 %192  ;;  %v862_v44 = vcombine.low %v490_v39, %v506_v12  ;;  %v2707_v32 = vrot.slane %v836_v16, %v2519_v63 }
  0xd2   : > { %v903_v18 = vrot.slane %v896_v33, %v2515_v41  ;;  %v930_v43 = vcombine.low %v2421_v60, %v538_v17  ;;  %v562_v51 = vpack.i.b16 %v197_v56, %v193_v8  ;;  %v564_v61 = vshrl.u32 %v193_v8, 16 }
  0xd3   : > { %v2704_v60 = vrot.slane %v922_v37, %v2515_v41  ;;  %v854_v34 = vcombine.low %v482_v25, %v498_v22  ;;  %v2725_v37 = vrot.slane %v862_v44, %v2515_v41  ;;  %v2735_v39 = vrot.slane %v837_v24, %v2519_v63 }
  0xd4   : > { %v904_v38 = vcombine.low %v895_v46, %v903_v18  ;;  %v905_v31 = vcombine.high %v895_v46, %v903_v18  ;;  %v2700_v26 = vrot.slane %v930_v43, %v2515_v41  ;;  %v566_v29 = vpack.i.b16 %v565_v4, %v564_v61  ;;  %v205_v54 = vpop.permute.xlu1 %204 }
  0xd5   : > { %v573_v17 = vshrl.u32 %v205_v54, 16  ;;  %v201_v33 = vpop.permute.xlu0 %200  ;;  %v2738_v22 = vrot.slane %v854_v34, %v2515_v41  ;;  %v1024_v23 = vcombine.low %v3113_v15, %v562_v51 }
  0xd6   : > { %v570_v21 = vpack.i.b16 %v205_v54, %v201_v33  ;;  %v572_v56 = vshrl.u32 %v201_v33, 16  ;;  %v2710_v57 = vrot.slane %v904_v38, %v2519_v63  ;;  %v938_v42 = vcombine.low %v2704_v60, %v2700_v26 }
  0xd7   : > { %v939_v53 = vcombine.high %v2704_v60, %v2700_v26  ;;  %v1058_v36 = vcombine.low %v2431_v30, %v566_v29  ;;  %v2722_v46 = vrot.slane %v905_v31, %v2519_v63  ;;  %v1211_v30 = vcombine.high %v2686_v11, %v2697_v50 }
  0xd8   : > { %v574_v49 = vpack.i.b16 %v573_v17, %v572_v56  ;;  %v213_v12 = vpop.permute.xlu1 %212  ;;  %v1962_v16 = vcombine.high %v2707_v32, %v2710_v57  ;;  %v1032_v4 = vcombine.low %v556_v28, %v570_v21  ;;  %v2744_v28 = vrot.slane %v1210_v27, %v2519_v63 }
  0xd9   : > { %v581_v8 = vshrl.u32 %v213_v12, 16  ;;  %v209_v18 = vpop.permute.xlu0 %208  ;;  %v1065_v50 = vrot.slane %v1058_v36, %v2515_v41  ;;  %v1919_v54 = vcombine.low %v2735_v39, %v2722_v46  ;;  %v870_v24 = vcombine.low %v2738_v22, %v2725_v37 }
  0xda   : > { %v1066_v43 = vcombine.low %v2443_v35, %v574_v49  ;;  %v578_v61 = vpack.i.b16 %v213_v12, %v209_v18  ;;  %v580_v25 = vshrl.u32 %v209_v18, 16  ;;  %1411 = vrot.lane.b32.xlu1 %v1962_v16, %s2105_s4  ;;  %v3114_v35 = vcombine.low %v2618_v47, %v2625_v13 }
  0xdb   : > { %v1039_v2 = vrot.slane %v1032_v4, %v2515_v41  ;;  %v1907_v44 = vcombine.low %v2707_v32, %v2710_v57  ;;  %v3115_v17 = vpack.i.b16 %v2311_v0, %v2316_v7  ;;  %v1031_v27 = vrot.slane %v1024_v23, %v2515_v41 }
  0xdc   : > { %v2750_v11 = vrot.slane %v3114_v35, %v2519_v63  ;;  %v1073_v38 = vrot.slane %v1066_v43, %v2515_v41  ;;  %v582_v31 = vpack.i.b16 %v581_v8, %v580_v25  ;;  %v221_v29 = vpop.permute.xlu1 %220  ;;  %v2768_v49 = vrot.slane %v938_v42, %v2519_v63 }
  0xdd   : > { %v589_v6 = vshrl.u32 %v221_v29, 16  ;;  %v217_v51 = vpop.permute.xlu0 %216  ;;  %v1092_v33 = vcombine.low %v578_v61, %v3115_v17  ;;  %v3116_v4 = vpack.i.b16 %v2325_v14, %v2331_v19  ;;  %v2776_v18 = vrot.slane %v1211_v30, %v2519_v63 }
  0xde   : > { %v586_v21 = vpack.i.b16 %v221_v29, %v217_v51  ;;  %v588_v56 = vshrl.u32 %v217_v51, 16  ;;  %1449 = vrot.lane.b32.xlu1 %v1919_v54, %s2106_s5  ;;  %v1074_v34 = vcombine.low %v1065_v50, %v1073_v38  ;;  %v1126_v36 = vcombine.low %v582_v31, %v2453_v40 }
  0xdf   : > { %v1075_v12 = vcombine.high %v1065_v50, %v1073_v38  ;;  %v1934_v7 = vcombine.low %v2744_v28, %v2750_v11  ;;  %v1040_v43 = vcombine.low %v1031_v27, %v1039_v2  ;;  %v1041_v61 = vcombine.high %v1031_v27, %v1039_v2 }
  0xe0   : > { %v590_v16 = vpack.i.b16 %v589_v6, %v588_v56  ;;  %v1100_v8 = vcombine.low %v586_v21, %v3116_v4  ;;  %v195_v0 = vpop.permute.xlu1 %194  ;;  %v878_v42 = vrot.slane %v870_v24, %v2519_v63  ;;  %v1099_v15 = vrot.slane %v1092_v33, %v2515_v41 }
  0xe1   : > { %v433_v25 = vshrl.u32 %v195_v0, 16  ;;  %v191_v40 = vpop.permute.xlu0 %190  ;;  %v1133_v35 = vrot.slane %v1126_v36, %v2515_v41  ;;  %v1977_v50 = vcombine.high %v2744_v28, %v2750_v11  ;;  %v3117_v38 = vcombine.high %v2618_v47, %v2625_v13 }
  0xe2   : > { %v1107_v23 = vrot.slane %v1100_v8, %v2515_v41  ;;  %v1134_v14 = vcombine.low %v590_v16, %v2461_v58  ;;  %v432_v19 = vshrl.u32 %v191_v40, 16  ;;  %1538 = vrot.lane.b32.xlu1 %v1934_v7, %s2108_s7  ;;  %v1910_v30 = vcombine.low %v878_v42, %v2768_v49 }
  0xe3   : > { %v2791_v31 = vrot.slane %v3117_v38, %v2519_v63  ;;  %v871_v17 = vcombine.high %v2738_v22, %v2725_v37  ;;  %v2797_v33 = vrot.slane %v1040_v43, %v2519_v63  ;;  %v2800_v28 = vrot.slane %v1041_v61, %v2519_v63 }
  0xe4   : > { %v1108_v29 = vcombine.low %v1099_v15, %v1107_v23  ;;  %v1109_v54 = vcombine.high %v1099_v15, %v1107_v23  ;;  %v1141_v58 = vrot.slane %v1134_v14, %v2515_v41  ;;  %v434_v2 = vpack.i.b16 %v433_v25, %v432_v19  ;;  %v203_v6 = vpop.permute.xlu1 %202 }
  0xe5   : > { %v441_v51 = vshrl.u32 %v203_v6, 16  ;;  %v199_v24 = vpop.permute.xlu0 %198  ;;  %v2804_v11 = vrot.slane %v1074_v34, %v2519_v63  ;;  %v2813_v37 = vrot.slane %v1075_v12, %v2519_v63  ;;  %v430_v36 = vpack.i.b16 %v195_v0, %v191_v40 }
  0xe6   : > { %v438_v47 = vpack.i.b16 %v203_v6, %v199_v24  ;;  %v440_v13 = vshrl.u32 %v199_v24, 16  ;;  %1392 = vrot.lane.b32.xlu1 %v1910_v30, %s2108_s7  ;;  %v1142_v21 = vcombine.low %v1133_v35, %v1141_v58  ;;  %v2807_v56 = vrot.slane %v1108_v29, %v2519_v63 }
  0xe7   : > { %v2810_v27 = vrot.slane %v1109_v54, %v2519_v63  ;;  %v1143_v22 = vcombine.high %v1133_v35, %v1141_v58  ;;  %v718_v16 = vcombine.low %v2471_v45, %v434_v2  ;;  %v1965_v30 = vcombine.high %v878_v42, %v2768_v49 }
  0xe8   : > { %v442_v4 = vpack.i.b16 %v441_v51, %v440_v13  ;;  %v211_v8 = vpop.permute.xlu1 %210  ;;  %v2817_v7 = vrot.slane %v1142_v21, %v2519_v63  ;;  %v1973_v61 = vcombine.high %v2797_v33, %v2807_v56  ;;  %v692_v45 = vcombine.low %v424_v59, %v438_v47  ;;  %v3119_v13 = vld [vmem:[#allocation5_spill] sm:$0xff]  ;;  %v3120_v21 = vld [vmem:[#allocation6_spill] sm:$0xff] }
  0xe9   : > { %v449_v34 = vshrl.u32 %v211_v8, 16  ;;  %v207_v43 = vpop.permute.xlu0 %206  ;;  %v1942_v25 = vcombine.low %v2800_v28, %v2810_v27  ;;  %v2824_v12 = vrot.slane %v1143_v22, %v2519_v63  ;;  %v1979_v35 = vcombine.high %v2800_v28, %v2810_v27 }
  0xea   : > { %v726_v0 = vcombine.low %v2483_v52, %v442_v4  ;;  %v446_v40 = vpack.i.b16 %v211_v8, %v207_v43  ;;  %v448_v15 = vshrl.u32 %v207_v43, 16  ;;  %1576 = vrot.lane.b32.xlu1 %v1977_v50, %s2109_s8  ;;  %v1933_v23 = vcombine.low %v2804_v11, %v2817_v7 }
  0xeb   : > { %v1976_v14 = vcombine.high %v2804_v11, %v2817_v7  ;;  %v1945_v19 = vcombine.low %v2813_v37, %v2824_v12  ;;  %v725_v10 = vrot.slane %v718_v16, %v2515_v41  ;;  %v684_v50 = vcombine.low %v420_v62, %v430_v36  ;;  %v3122_v36 = vld [vmem:[#allocation15_spill] sm:$0xff]  ;;  %v1758_v7 = vld [vmem:[%s3070_s2] sm:$0xff] }
  0xec   : > { %v733_v20 = vrot.slane %v726_v0, %v2515_v41  ;;  %v450_v52 = vpack.i.b16 %v449_v34, %v448_v15  ;;  %v219_v59 = vpop.permute.xlu1 %218  ;;  %1536 = vrot.lane.b32.xlu0 %v1933_v23, %s2108_s7  ;;  %v1982_v54 = vcombine.high %v2813_v37, %v2824_v12  ;;  %v1930_v58 = vcombine.low %v2797_v33, %v2807_v56  ;;  %v3125_v0 = vld [vmem:[#allocation17_spill] sm:$0xff] }
  0xed   : > { %v457_v38 = vshrl.u32 %v219_v59, 16  ;;  %v215_v29 = vpop.permute.xlu0 %214  ;;  %v3118_v2 = vpack.i.b16 %v2382_v5, %v2387_v9  ;;  %v699_v3 = vrot.slane %v692_v45, %v2515_v41  ;;  %v953_v62 = vrot.slane %v939_v53, %v2519_v63  ;;  %v3124_v45 = vld [vmem:[#allocation16_spill] sm:$0xff] }
  0xee   : > { %v454_v51 = vpack.i.b16 %v219_v59, %v215_v29  ;;  %v456_v49 = vshrl.u32 %v215_v29, 16  ;;  %1430 = vrot.lane.b32.xlu1 %v1965_v30, %s2109_s8  ;;  %v734_v1 = vcombine.low %v725_v10, %v733_v20  ;;  %v735_v42 = vcombine.high %v725_v10, %v733_v20 }
  0xef   : > { %v752_v6 = vcombine.low %v446_v40, %v3118_v2  ;;  %v786_v24 = vcombine.low %v450_v52, %v2493_v55  ;;  %v3121_v5 = vpack.i.b16 %v3119_v13, %v3120_v21  ;;  %v1946_v22 = vcombine.low %v2776_v18, %v2791_v31  ;;  %v3123_v55 = vld [vmem:[#allocation7_spill] sm:$0xff] }
  0xf0   : > { %v458_v47 = vpack.i.b16 %v457_v38, %v456_v49  ;;  %v1177_v16 = vcombine.high %v3122_v36, %v2592_v48  ;;  %v691_v4 = vrot.slane %v684_v50, %v2515_v41  ;;  %v885_v8 = vrot.slane %v871_v17, %v2519_v63  ;;  %v3128_v49 = vld [vmem:[#allocation9_spill] sm:$0xff] }
  0xf1   : > { %v760_v9 = vcombine.low %v454_v51, %v3121_v5  ;;  %v759_v26 = vrot.slane %v752_v6, %v2515_v41  ;;  %v3126_v40 = vcombine.high %v3124_v45, %v3125_v0  ;;  %v793_v15 = vrot.slane %v786_v24, %v2515_v41  ;;  %v3127_v51 = vld [vmem:[#allocation8_spill] sm:$0xff] }
  0xf2   : > { %v794_v53 = vcombine.low %v458_v47, %v3123_v55  ;;  %1614 = vrot.lane.b32.xlu1 %v1946_v22, %s2110_s9  ;;  %v700_v34 = vcombine.low %v691_v4, %v699_v3  ;;  %v1922_v43 = vcombine.low %v885_v8, %v953_v62  ;;  %v1191_v20 = vrot.slane %v1177_v16, %v2519_v63 }
  0xf3   : > { %v767_v60 = vrot.slane %v760_v9, %v2515_v41  ;;  %v1259_v48 = vrot.slane %v3126_v40, %v2519_v63  ;;  %v742_v29 = vrot.slane %v734_v1, %v2519_v63  ;;  %v749_v6 = vrot.slane %v735_v42, %v2519_v63 }
  0xf4   : > { %v801_v10 = vrot.slane %v794_v53, %v2515_v41  ;;  %v2885_v38 = vrot.slane %v700_v34, %v2519_v63  ;;  %v3129_v24 = vcombine.low %v3127_v51, %v3128_v49  ;;  %v1968_v42 = vcombine.high %v2735_v39, %v2722_v46  ;;  %v3133_v34 = vld [vmem:[#allocation11_spill] sm:$0xff] }
  0xf5   : > { %v768_v23 = vcombine.low %v759_v26, %v767_v60  ;;  %v769_v17 = vcombine.high %v759_v26, %v767_v60  ;;  %v1980_v50 = vcombine.high %v1191_v20, %v1259_v48  ;;  %v1983_v36 = vcombine.high %v2776_v18, %v2791_v31 }
  0xf6   : > { %1468 = vrot.lane.b32.xlu1 %v1922_v43, %s2110_s9  ;;  %v802_v52 = vcombine.low %v793_v15, %v801_v10  ;;  %v803_v59 = vcombine.high %v793_v15, %v801_v10  ;;  %v1014_v47 = vrot.slane %v3129_v24, %v2519_v63  ;;  %v701_v16 = vcombine.high %v691_v4, %v699_v3  ;;  %v3131_v3 = vld [vmem:[#allocation14_spill] sm:$0xff]  ;;  %v3136_v24 = vld [vmem:[#allocation13_spill] sm:$0xff] }
  0xf7   : > { %v2882_v30 = vrot.slane %v768_v23, %v2519_v63  ;;  %v3130_v60 = vcombine.high %v3127_v51, %v3128_v49  ;;  %v1971_v46 = vcombine.high %v885_v8, %v953_v62  ;;  %v783_v39 = vrot.slane %v769_v17, %v2519_v63  ;;  %v3132_v8 = vld [vmem:[#allocation12_spill] sm:$0xff]  ;;  %v3135_v51 = vld [vmem:[#allocation10_spill] sm:$0xff] }
  0xf8   : > { %v810_v2 = vrot.slane %v802_v52, %v2519_v63  ;;  %v817_v41 = vrot.slane %v803_v59, %v2519_v63  ;;  %v1911_v22 = vcombine.low %v1014_v47, %v1014_v47  ;;  %v1966_v26 = vcombine.high %v1014_v47, %v1014_v47 }
  0xf9   : > { %v1906_v13 = vcombine.low %v2885_v38, %v2882_v30  ;;  %v1021_v55 = vrot.slane %v3130_v60, %v2519_v63  ;;  %v715_v18 = vrot.slane %v701_v16, %v2519_v63  ;;  %v1981_v4 = vcombine.high %v3131_v3, %v3131_v3 }
  0xfa   : > { %1633 = vrot.lane.b32.xlu1 %v1980_v50, %s2107_s6  ;;  %v1909_v21 = vcombine.low %v742_v29, %v810_v2  ;;  %v1921_v5 = vcombine.low %v749_v6, %v817_v41  ;;  %v1970_v9 = vcombine.high %v749_v6, %v817_v41  ;;  %v1964_v1 = vcombine.high %v742_v29, %v810_v2 }
  0xfb   : > { %v1923_v53 = vcombine.low %v1021_v55, %v1021_v55  ;;  %v1918_v31 = vcombine.low %v715_v18, %v783_v39  ;;  %v1972_v62 = vcombine.high %v1021_v55, %v1021_v55  ;;  %v3134_v43 = vcombine.high %v3132_v8, %v3133_v34  ;;  %v3138_v8 = vld [vmem:[#allocation19_spill] sm:$0xff] }
  0xfc   : > { %1390 = vrot.lane.b32.xlu0 %v1909_v21, %s2108_s7  ;;  %v1967_v0 = vcombine.high %v715_v18, %v783_v39  ;;  %v1943_v23 = vcombine.low %v1191_v20, %v1259_v48  ;;  %v2112_v48 = vmov 0   ;;  %v1908_v49 = vcombine.low %v3135_v51, %v3135_v51 }
  0xfd   : > { %v1361_v45 = vrot.slane %v3134_v43, %v2519_v63  ;;  %v1961_v63 = vcombine.high %v2885_v38, %v2882_v30  ;;  %1805 = vmatprep.mubr.bf16.mxu0 %v2112_v48  ;;  %2038 = vset.pattern.permute.xlu0 %v2112_v48  ;;  %v1932_v47 = vcombine.low %v3136_v24, %v3136_v24 }
  0xfe   : > { %1487 = vrot.lane.b32.xlu1 %v1968_v42, %s2107_s6 }
  0xff   : > { %v1947_v40 = vcombine.low %v1361_v45, %v1361_v45  ;;  %v1984_v15 = vcombine.high %v1361_v45, %v1361_v45 }
 0x100   : > { %1394 = vrot.lane.b32.xlu0 %v1911_v22, %s2108_s7  ;;  %s2043_s7 = sshll.u32 %s2113_s16, 4  ;;  %s2044_s7 = int_to_ptr.vmem [resolvable:$false] %s2043_s7 }
 0x101   : > { %p2046_p0 = scmp.lt.s32.totalorder %s1838_s28, %s2044_s7 }
 0x102   : > { %1652 = vrot.lane.b32.xlu1 %v1983_v36, %s2111_s10 }
 0x104   : > { %1432 = vrot.lane.b32.xlu0 %v1966_v26, %s2109_s8 }
 0x106   : > { %1506 = vrot.lane.b32.xlu1 %v1971_v46, %s2111_s10 }
 0x108   : > { %1470 = vrot.lane.b32.xlu0 %v1923_v53, %s2110_s9 }
 0x10a   : > { %1447 = vrot.lane.b32.xlu1 %v1918_v31, %s2106_s5 }
 0x10c   : > { %1635 = vrot.lane.b32.xlu0 %v1981_v4, %s2107_s6 }
 0x10e   : > { %1466 = vrot.lane.b32.xlu1 %v1921_v5, %s2110_s9 }
 0x110   : > { %1508 = vrot.lane.b32.xlu0 %v1972_v62, %s2111_s10  ;;  %v3137_v62 = vld [vmem:[#allocation18_spill] sm:$0xff] }
 0x111   : > { %v3139_v34 = vcombine.low %v3137_v62, %v3138_v8 }
 0x112   : > { %1485 = vrot.lane.b32.xlu1 %v1967_v0, %s2107_s6 }
 0x114   : > { %1616 = vrot.lane.b32.xlu0 %v1947_v40, %s2110_s9 }
 0x116   : > { %1504 = vrot.lane.b32.xlu1 %v1970_v9, %s2111_s10  ;;  %v1414_v20 = vpop.permute.xlu0 %1413 }
 0x118   : > { %1654 = vrot.lane.b32.xlu0 %v1984_v15, %s2111_s10 }
 0x11a   : > { %v1452_v28 = vpop.permute.xlu0 %1451 }
 0x11c   : > { %1595 = vrot.lane.b32.xlu0 %v1943_v23, %s2106_s5 }
 0x120   : > { %1555 = vrot.lane.b32.xlu0 %v1973_v61, %s2105_s4  ;;  %v1560_v61 = vpop.permute.xlu1 %1559 }
 0x124   : > { %1409 = vrot.lane.b32.xlu0 %v1961_v63, %s2105_s4  ;;  %v1598_v11 = vpop.permute.xlu1 %1597  ;;  %s3033_s4 = scalar_lea.hbm %s3071_s3, %s1985_s26 }
 0x128   : > { %1574 = vrot.lane.b32.xlu0 %v1976_v14, %s2109_s8 }
 0x12c   : > { %1428 = vrot.lane.b32.xlu0 %v1964_v1, %s2109_s8  ;;  %s2045_s8 = scalar_lea.vmem %s2044_s7, 512 }
 0x130   : > { %1593 = vrot.lane.b32.xlu0 %v1942_v25, %s2106_s5  ;;  %v1541_v25 = vpop.permute.xlu1 %1540  ;;  %s1823_s5 = scalar_lea.sflag [#allocation3], %s161_s24 }
 0x131   : > { %v1718_v1 = vsel %vm1656_vm6, %v1932_v47, %v1541_v25 }
 0x132   : > { %v1724_v36 = vsel %vm1666_vm7, %v1718_v1, %v1560_v61  ;;  %v1757_v1 = vld [vmem:[%s3069_s1] sm:$0xf] }
 0x134   : > { %1612 = vrot.lane.b32.xlu0 %v1945_v19, %s2110_s9  ;;  %v1579_v14 = vpop.permute.xlu1 %1578 }
 0x135   : > { %v1730_v26 = vsel %vm1673_vm8, %v1724_v36, %v1579_v14 }
 0x136   : > { %v1736_v39 = vsel %vm1680_vm9, %v1730_v26, %v1598_v11 }
 0x138   : > { %1631 = vrot.lane.b32.xlu0 %v1979_v35, %s2107_s6  ;;  %v1558_v17 = vpop.permute.xlu1 %1557  ;;  %v1490_v35 = vpop.permute.xlu0 %1489  ;;  %s2039_s6 = scalar_lea.vmem %s1838_s28, 256 }
 0x139   : > { %p2040_p11 = scmp.ne.s32.totalorder %s1838_s28, %s2039_s6  ;;  %p2047_p1 = scmp.lt.s32.totalorder %s2045_s8, %s2039_s6 }
 0x13b   : > { %p2041_p12 = pnand %p2040_p11, %p2172_p5  ;;  %p2048_p2 = por %p2047_p1, %p2046_p0 }
 0x13c   : > { %1650 = vrot.lane.b32.xlu0 %v1982_v54, %s2111_s10 }
 0x13d   : > { %p2042_p13 = pneg %p2041_p12 }
 0x13f   : > { %p2049_p3 = pnand %p2048_p2, %p2042_p13 }
 0x140   : > { %1761 = vperm.xlu0 %2038, %v1758_v7  }
 0x14c   : > { %v1412_v19 = vpop.permute.xlu1 %1411 }
 0x150   : > { %v1450_v10 = vpop.permute.xlu1 %1449 }
 0x154   : > { %v1539_v52 = vpop.permute.xlu1 %1538 }
 0x155   : > { %v1715_v43 = vsel %vm1656_vm6, %v3139_v34, %v1539_v52 }
 0x156   : > { %v1722_v57 = vsel %vm1666_vm7, %v1715_v43, %v1558_v17 }
 0x158   : > { %v1393_v27 = vpop.permute.xlu1 %1392 }
 0x159   : > { %v1662_v3 = vsel %vm1656_vm6, %v1907_v44, %v1393_v27 }
 0x15a   : > { %v1670_v23 = vsel %vm1666_vm7, %v1662_v3, %v1412_v19 }
 0x15c   : > { %v1577_v59 = vpop.permute.xlu1 %1576 }
 0x15d   : > { %v1728_v63 = vsel %vm1673_vm8, %v1722_v57, %v1577_v59 }
 0x15e   : > { %v2961_v50 = vpop.permute.xlu0 %1536 }
 0x160   : > { %v1431_v37 = vpop.permute.xlu1 %1430 }
 0x161   : > { %v1677_v44 = vsel %vm1673_vm8, %v1670_v23, %v1431_v37 }
 0x162   : > { %v1684_v11 = vsel %vm1680_vm9, %v1677_v44, %v1450_v10 }
 0x164   : > { %v1615_v54 = vpop.permute.xlu1 %1614 }
 0x168   : > { %v1469_v6 = vpop.permute.xlu1 %1468 }
 0x169   : > { %v1691_v14 = vsel %vm1687_vm10, %v1684_v11, %v1469_v6 }
 0x16c   : > { %v1634_v5 = vpop.permute.xlu1 %1633 }
 0x16e   : > { %v2963_v12 = vpop.permute.xlu0 %1390 }
 0x16f   : > { %v1659_v37 = vsel %vm1656_vm6, %v1906_v13, %v2963_v12 }
 0x170   : > { %v1488_v60 = vpop.permute.xlu1 %1487 }
 0x172   : > { %v1395_v29 = vpop.permute.xlu0 %1394 }
 0x173   : > { %v1665_v21 = vsel %vm1656_vm6, %v1908_v49, %v1395_v29  ;;  %v1712_v49 = vsel %vm1656_vm6, %v1930_v58, %v2961_v50 }
 0x174   : > { %v1672_v42 = vsel %vm1666_vm7, %v1665_v21, %v1414_v20  ;;  %v1653_v45 = vpop.permute.xlu1 %1652  ;;  %v1698_v20 = vsel %vm1694_vm11, %v1691_v14, %v1488_v60 }
 0x176   : > { %v1433_v2 = vpop.permute.xlu0 %1432 }
 0x177   : > { %v1679_v22 = vsel %vm1673_vm8, %v1672_v42, %v1433_v2 }
 0x178   : > { %v1686_v55 = vsel %vm1680_vm9, %v1679_v22, %v1452_v28  ;;  %v1507_v7 = vpop.permute.xlu1 %1506 }
 0x179   : > { %v1706_v28 = vsel %vm1701_vm12, %v1698_v20, %v1507_v7 }
 0x17a   : > { %v1471_v41 = vpop.permute.xlu0 %1470 }
 0x17b   : > { %v1693_v46 = vsel %vm1687_vm10, %v1686_v55, %v1471_v41 }
 0x17c   : > { %v1700_v31 = vsel %vm1694_vm11, %v1693_v46, %v1490_v35  ;;  %v1448_v59 = vpop.permute.xlu1 %1447 }
 0x17e   : > { %v1636_v9 = vpop.permute.xlu0 %1635 }
 0x180   : > { %v1467_v29 = vpop.permute.xlu1 %1466 }
 0x182   : > { %v1509_v16 = vpop.permute.xlu0 %1508 }
 0x183   : > { %v1709_v4 = vsel %vm1701_vm12, %v1700_v31, %v1509_v16 }
 0x184   : > { %v1769_v32 = vsel %vm1768_vm13, %v1709_v4, 0  ;;  %v1486_v24 = vpop.permute.xlu1 %1485 }
 0x186   : > { %v1617_v53 = vpop.permute.xlu0 %1616 }
 0x187   : > { %v1742_v18 = vsel %vm1687_vm10, %v1736_v39, %v1617_v53 }
 0x188   : > { %v1748_v40 = vsel %vm1694_vm11, %v1742_v18, %v1636_v9  ;;  %v1505_v56 = vpop.permute.xlu1 %1504 }
 0x18a   : > { %v1655_v0 = vpop.permute.xlu0 %1654 }
 0x18b   : > { %v1756_v15 = vsel %vm1701_vm12, %v1748_v40, %v1655_v0 }
 0x18c   : > { %1954 = vmatprep.subr.msk.bf16.mxu0 %vm1768_vm13, %v1756_v15 }
 0x18d   : > { %1784 = vmatpush1.bf16.msra.mxu0 %v1769_v32 }
 0x18e   : > { %v1596_v48 = vpop.permute.xlu0 %1595 }
 0x18f   : > { %v1734_v61 = vsel %vm1680_vm9, %v1728_v63, %v1596_v48 }
 0x190   : > { %v1740_v25 = vsel %vm1687_vm10, %v1734_v61, %v1615_v54 }
 0x191   : > { %v1746_v19 = vsel %vm1694_vm11, %v1740_v25, %v1634_v5 }
 0x192   : > { %v1556_v17 = vpop.permute.xlu0 %1555  ;;  %v1753_v52 = vsel %vm1701_vm12, %v1746_v19, %v1653_v45 }
 0x193   : > { %1785 = vmatprep.subr.bf16.mxu0 %v1753_v52  ;;  %v1720_v30 = vsel %vm1666_vm7, %v1712_v49, %v1556_v17 }
 0x194   : > { %1786 = vmatpush1.bf16.msra.mxu0 %v1706_v28 }
 0x196   : > { %v1410_v27 = vpop.permute.xlu0 %1409 }
 0x197   : > { %v1668_v2 = vsel %vm1666_vm7, %v1659_v37, %v1410_v27 }
 0x19a   : > { %v1575_v35 = vpop.permute.xlu0 %1574 }
 0x19b   : > { %v1726_v12 = vsel %vm1673_vm8, %v1720_v30, %v1575_v35 }
 0x19e   : > { %v1429_v10 = vpop.permute.xlu0 %1428 }
 0x19f   : > { %v1675_v6 = vsel %vm1673_vm8, %v1668_v2, %v1429_v10 }
 0x1a0   : > { %v1682_v51 = vsel %vm1680_vm9, %v1675_v6, %v1448_v59 }
 0x1a1   : > { %v1689_v13 = vsel %vm1687_vm10, %v1682_v51, %v1467_v29 }
 0x1a2   : > { %v1594_v54 = vpop.permute.xlu0 %1593  ;;  %v1696_v5 = vsel %vm1694_vm11, %v1689_v13, %v1486_v24 }
 0x1a3   : > { %v1732_v47 = vsel %vm1680_vm9, %v1726_v12, %v1594_v54  ;;  %v1703_v50 = vsel %vm1701_vm12, %v1696_v5, %v1505_v56 }
 0x1a6   : > { %v1613_v41 = vpop.permute.xlu0 %1612 }
 0x1a7   : > { %v1738_v21 = vsel %vm1687_vm10, %v1732_v47, %v1613_v41 }
 0x1aa   : > { %v1632_v38 = vpop.permute.xlu0 %1631 }
 0x1ab   : > { %v1744_v9 = vsel %vm1694_vm11, %v1738_v21, %v1632_v38 }
 0x1ae   : > { %v1651_v33 = vpop.permute.xlu0 %1650 }
 0x1af   : > { %v1750_v58 = vsel %vm1701_vm12, %v1744_v9, %v1651_v33 }
 0x1b0   : > { %1787 = vmatprep.subr.bf16.mxu0 %v1750_v58 }
 0x1b1   : > { %1788 = vmatpush1.bf16.msra.mxu0 %v1703_v50 }
 0x1b4   : > { %1955 = vmatmul.mubr.msk.bf16.vlgmr.msra.gmra.mxu0 %vm1764_vm14, %v1757_v1 }
 0x1bb   : > { %v1762_v42 = vpop.permute.xlu0 %1761 }
 0x274   : > { %v1807_v22 = vpop.f32.mrf.mxu0 }
 0x275   : > { %v1808_v36 = vadd.f32 %v1807_v22, %v1762_v42 }
 0x276   : > { %v1809_v16 = vpop.f32.mrf.mxu0 }
 0x277   : > { %vm1814_vm15 = vcmp.ge.f32.partialorder %v1808_v36, 0.0  ;;  %v1816_v26 = vmul.f32 0.1, %v1808_v36  ;;  %v1810_v60 = vadd.f32 %v1809_v16, %v1762_v42 }
 0x278   : > { %v1811_v55 = vpop.f32.mrf.mxu0 }
 0x279   : > { %v1818_v46 = vsel %vm1814_vm15, %v1808_v36, %v1816_v26  ;;  %vm1815_vm0 = vcmp.ge.f32.partialorder %v1810_v60, 0.0  ;;  %v1817_v39 = vmul.f32 0.1, %v1810_v60 }
 0x27a   : > { %v1812_v53 = vpop.f32.mrf.mxu0  ;;  %1820 = vst [vmem:[%s163_s27] sm:$0xff] %v1818_v46 }
 0x27b   : > { %v1819_v18 = vsel %vm1815_vm0, %v1810_v60, %v1817_v39 }
 0x27c   : > { %1821 = vst [vmem:[%s163_s27 + $0x8] sm:$0xff] %v1819_v18 }
 0x27d   : > { %2052 = shalt.err (!%p2049_p3)
}
 0x27e   : > { %s2053_s9 = scalar_lea.hbm %s3033_s4, 256  ;;  %s2057_s17 = scalar_lea.hbm %s3071_s3, 512 }
 0x27f   : > { %p2054_p4 = scmp.ne.s32.totalorder %s3033_s4, %s2053_s9  ;;  %p2058_p9 = scmp.lt.s32.totalorder %s3033_s4, %s3071_s3 }
 0x280   : > { %p2059_p10 = scmp.lt.s32.totalorder %s2057_s17, %s2053_s9 }
 0x281   : > { %p2055_p7 = pnand %p2054_p4, %p2172_p5 }
 0x282   : > { %p2060_p11 = por %p2059_p10, %p2058_p9 }
 0x283   : > { %p2056_p8 = pneg %p2055_p7 }
 0x285   : > { %p2061_p12 = pnand %p2060_p11, %p2056_p8 }
 0x287   : > { %2064 = shalt.err (!%p2061_p12)
}
 0x288   : > { %1987 = dma.vmem_to_hbm [thread:$0]  (%p2172_p5), %s1838_s28, 256, %s3033_s4, %s1823_s5  }
 0x289 PF: > { %p1993_p13 = scmp.ge.s32.totalorder %s2099_s15, 2  ;;  %s1849_s24 = sand.u32 1, %s2087_s12  }
 0x28a   : > { %s1850_s25 = scalar_lea.sflag [#allocation3], %s1849_s24 }
 0x28b   : > { %p1990_p0 = pnand %p1993_p13, %p2176_p6 }
 0x28d   : > { %p1991_p1 = pneg %p1990_p0 }
 0x28f   : > { %2082 = dma.done.wait (%p1991_p1), %s1850_s25, 256  }
 0x290   : > { %2084 = vsyncadd (%p1991_p1), %s1850_s25, 4294967040  ;;  %p13_p2 = scmp.ge.s32.totalorder %s2159_s18, 4   ;;  %s3140_s12 = smov %s2091_s13 }
 0x291   : > { %s3141_s13 = smov %s2095_s14  ;;  %s3142_s14 = smov %s2170_s21 }
 0x292   : > { %s3143_s15 = smov %s2159_s18  ;;  %15 = sbr.rel (!%p13_p2) target bundleno = 3 (0x3), region = 67 }
 0x297   :  { %1855 = vsyncpa [#allocation3], 1 }
 0x298   :  { %1857 = vsyncpa [#allocation3 + $0x1], 1 }

</bundles_post_ra>
